<compile_context>
chip_gen: v5e
topology: v5e:2x2
jax: 0.10.0
libtpu: 0.0.40
codegen_flags: <defaults>
</compile_context>

<pallas_src>
import functools

import numpy as np
import jax
import jax.numpy as jnp
from jax.experimental import pallas as pl
from jax.experimental.pallas import tpu as pltpu

_COMPUTE_DTYPE = jnp.bfloat16  # MXU-native on v5e/v6e/v7x; accumulation stays f32.


def _spectrum_kernel(x_ref, r_ref, c_ref, o_ref, *, h, pw, nonlin):
    """One grid step: P slabs packed along lanes as one (H, P*W) block.

    x_ref : (1, H, P*W)   bf16  slab p occupies lanes [p*W, (p+1)*W)
    r_ref : (2H, H)       bf16  [cos_H; sin_H] stacked row-DFT matrix
    c_ref : (2PW, 2PW)    bf16  [[Cbd, Sbd], [-Sbd, Cbd]] fused column matrix
    o_ref : (1, H, P*W)   f32   nonlin(|F|^2), same lane packing as the input
    """
    x = x_ref[0]                 # (H, PW)
    rmat = r_ref[...]            # (2H, H)
    cmat = c_ref[...]            # (2PW, 2PW)

    # MXU matmul #1 — row (H-axis) transform for all P slabs at once:
    #   [a; b] = [C_H; S_H] @ x   (stacked along the sublane axis).
    ab = jnp.dot(rmat, x, preferred_element_type=jnp.float32)       # (2H, PW) f32
    ab = ab.astype(cmat.dtype)                                       # bf16 for pass 2

    # Restack [a; b] (rows) as [a | b] (lanes) so the column transform fuses.
    ab_l = jnp.concatenate([ab[:h, :], ab[h:, :]], axis=-1)          # (H, 2PW)

    # MXU matmul #2 — column (W-axis) transform for all P slabs:
    #   reim[:, :PW] = a@C - b@S = Re(F);  reim[:, PW:] = a@S + b@C = -Im(F).
    # NOTE: the "imaginary" half has the opposite sign of the true DFT; this is
    # harmless because only re^2 + im^2 is consumed.
    reim = jnp.dot(ab_l, cmat, preferred_element_type=jnp.float32)   # (H, 2PW) f32

    # Lean epilogue: square + lane-half add, no extra live buffers.
    mag = jnp.square(reim[:, :pw]) + jnp.square(reim[:, pw:])        # (H, PW)

    if nonlin is None:
        out = mag
    elif nonlin == 'logplus1':
        out = jnp.log1p(mag)
    elif nonlin == 'sqrt':
        out = jnp.sqrt(mag)
    else:
        raise ValueError(f'{nonlin}: unknown nonlinearity')

    o_ref[0] = out.astype(o_ref.dtype)


@functools.lru_cache(maxsize=None)
def _spectrum_matrices(h, w, p, dtype_name):
    """Fused DFT twiddle matrices, built once per (H, W, P) and cached."""
    def cos_sin(n):
        k = np.arange(n, dtype=np.int64)
        # Integer argument reduction keeps twiddles accurate for large n.
        phase = 2.0 * np.pi * ((k[:, None] * k[None, :]) % n) / float(n)
        return np.cos(phase), np.sin(phase)

    ch, sh = cos_sin(h)
    cw, sw = cos_sin(w)

    rmat = np.concatenate([ch, sh], axis=0)            # (2H, H)

    eye_p = np.eye(p)
    cbd = np.kron(eye_p, cw)                           # (PW, PW) block-diagonal
    sbd = np.kron(eye_p, sw)
    cmat = np.block([[cbd, sbd], [-sbd, cbd]])         # (2PW, 2PW)

    dtype = jnp.dtype(dtype_name)
    return jnp.asarray(rmat, dtype), jnp.asarray(cmat, dtype)


def _slabs_per_step(nc, w):
    """How many (H, W) slabs to pack along the lane axis per grid step.

    Targets ~256 output lanes per step (lane-dense stores / VPU work), never
    packs more slabs than exist, and prefers >= 2 grid steps (v7x megacore)
    when that can be done without dropping below 128 lanes.
    """
    lane_floor, lane_target = 128, 256
    if w >= lane_target:
        return 1
    b = min(nc, max(1, lane_target // w))
    if w < lane_floor:
        b = max(b, min(nc, -(-lane_floor // w)))
    if -(-nc // b) < 2 and b > 1:
        half = -(-nc // 2)
        if half < b and half * w >= lane_floor:
            b = half
    return b


def spectrum(x, nonlin='logplus1'):
    """x: (N, C, H, W) float -> (N, C, H, W) float32 (nonlin of |fft2(x)|^2)."""
    N, C, H, W = x.shape
    nc = N * C

    p = _slabs_per_step(nc, W)
    steps = -(-nc // p)
    nc_pad = steps * p
    pw = p * W

    xf = x.reshape(nc, H, W).astype(_COMPUTE_DTYPE)
    if nc_pad != nc:
        xf = jnp.concatenate(
            [xf, jnp.zeros((nc_pad - nc, H, W), xf.dtype)], axis=0)

    # Pack P slabs along the lane axis: (steps, P, H, W) -> (steps, H, P*W).
    xp = xf.reshape(steps, p, H, W).transpose(0, 2, 1, 3).reshape(steps, H, pw)

    rmat, cmat = _spectrum_matrices(H, W, p, jnp.dtype(_COMPUTE_DTYPE).name)

    kernel = functools.partial(_spectrum_kernel, h=H, pw=pw, nonlin=nonlin)

    out = pl.pallas_call(
        kernel,
        out_shape=jax.ShapeDtypeStruct((steps, H, pw), jnp.float32),
        grid_spec=pltpu.PrefetchScalarGridSpec(
            num_scalar_prefetch=0,
            grid=(steps,),
            in_specs=[
                pl.BlockSpec((1, H, pw), lambda i: (i, 0, 0)),
                # Constant twiddles: same block every step -> fetched once.
                pl.BlockSpec((2 * H, H), lambda i: (0, 0)),
                pl.BlockSpec((2 * pw, 2 * pw), lambda i: (0, 0)),
            ],
            out_specs=pl.BlockSpec((1, H, pw), lambda i: (i, 0, 0)),
        ),
        compiler_params=pltpu.CompilerParams(
            # "parallel" lets Mosaic shard the slab axis across v7x's 2 TCs.
            dimension_semantics=("parallel",),
            # Ceiling (not a reservation); headroom for large H/W tiles while
            # staying under v7x's 64 MiB physical VMEM.
            vmem_limit_bytes=48 * 1024 * 1024,
        ),
    )(xp, rmat, cmat)

    # Unpack lanes back to (N, C, H, W).
    y = out.reshape(steps, H, p, W).transpose(0, 2, 1, 3).reshape(nc_pad, H, W)
    return y[:nc].reshape(N, C, H, W)


if __name__ == "__main__":
    key = jax.random.PRNGKey(0)
    N, C, H, W = 2, 4, 16, 16
    x = jax.random.normal(key, (N, C, H, W), dtype=jnp.float32)

    y = spectrum(x, nonlin='logplus1')
    y = jax.block_until_ready(y)
    assert y.shape == (N, C, H, W)

    # Reference (same semantics as the torch module): log(1 + |fft2(x)|^2).
    f = jnp.fft.fft2(x.astype(jnp.complex64), axes=(-2, -1))
    ref = jnp.log1p(jnp.real(f) ** 2 + jnp.imag(f) ** 2)

    err = jnp.abs(y - ref)
    mean_err = float(jnp.mean(err))
    max_err = float(jnp.max(err))
    # bf16 MXU inputs with f32 accumulation: small, bounded deviation vs FFT.
    assert mean_err < 2e-2, f"mean abs err too large: {mean_err}"
    assert max_err < 2.5e-1, f"max abs err too large: {max_err}"

    print("KERNEL_OK")
</pallas_src>

<mosaic_0001>
module attributes {stable_mosaic.version = 11 : i64} {
  func.func @_spectrum_kernel(%arg0: i32, %arg1: memref<1x16x128xbf16, #tpu.memory_space<vmem>>, %arg2: memref<32x16xbf16, #tpu.memory_space<vmem>>, %arg3: memref<256x256xbf16, #tpu.memory_space<vmem>>, %arg4: memref<1x16x128xf32, #tpu.memory_space<vmem>>) attributes {dimension_semantics = [#tpu.dimension_semantics<parallel>], iteration_bounds = array<i64: 1>, scalar_prefetch = 0 : i64, scratch_operands = 0 : i64, tpu.core_type = #tpu.core_type<tc>, window_params = [{transform_indices = @transform_0, window_bounds = array<i64: 1, 16, 128>}, {pipeline_mode = #tpu.pipeline_mode<synchronous>, transform_indices = @transform_1, window_bounds = array<i64: 32, 16>}, {pipeline_mode = #tpu.pipeline_mode<synchronous>, transform_indices = @transform_2, window_bounds = array<i64: 256, 256>}, {transform_indices = @transform_3, window_bounds = array<i64: 1, 16, 128>}]} {
    %c0 = arith.constant 0 : index
    %c0_0 = arith.constant 0 : index
    %c0_1 = arith.constant 0 : index
    %0 = vector.load %arg1[%c0, %c0_0, %c0_1] : memref<1x16x128xbf16, #tpu.memory_space<vmem>>, vector<1x16x128xbf16>
    %1 = vector.shape_cast %0 : vector<1x16x128xbf16> to vector<16x128xbf16>
    %c0_2 = arith.constant 0 : index
    %c0_3 = arith.constant 0 : index
    %2 = vector.load %arg2[%c0_2, %c0_3] : memref<32x16xbf16, #tpu.memory_space<vmem>>, vector<32x16xbf16>
    %c0_4 = arith.constant 0 : index
    %c0_5 = arith.constant 0 : index
    %3 = vector.load %arg3[%c0_4, %c0_5] : memref<256x256xbf16, #tpu.memory_space<vmem>>, vector<256x256xbf16>
    %cst = arith.constant dense<0.000000e+00> : vector<32x128xf32>
    %4 = tpu.matmul %2, %1, %cst {dimension_numbers = #tpu.dot_dimension_numbers<[1], [0], [0], [1], [0, 0, 1, 1], [], []>} : vector<32x16xbf16>, vector<16x128xbf16>, vector<32x128xf32> -> vector<32x128xf32>
    %5 = arith.truncf %4 : vector<32x128xf32> to vector<32x128xbf16>
    %6 = vector.extract_strided_slice %5 {offsets = [0, 0], sizes = [16, 128], strides = [1, 1]} : vector<32x128xbf16> to vector<16x128xbf16>
    %7 = vector.extract_strided_slice %5 {offsets = [16, 0], sizes = [16, 128], strides = [1, 1]} : vector<32x128xbf16> to vector<16x128xbf16>
    %8 = tpu.concatenate %6, %7 in 1 : vector<16x128xbf16>, vector<16x128xbf16> -> vector<16x256xbf16>
    %cst_6 = arith.constant dense<0.000000e+00> : vector<16x256xf32>
    %9 = tpu.matmul %8, %3, %cst_6 {dimension_numbers = #tpu.dot_dimension_numbers<[1], [0], [0], [1], [0, 0, 1, 1], [], []>} : vector<16x256xbf16>, vector<256x256xbf16>, vector<16x256xf32> -> vector<16x256xf32>
    %10 = vector.extract_strided_slice %9 {offsets = [0, 0], sizes = [16, 128], strides = [1, 1]} : vector<16x256xf32> to vector<16x128xf32>
    %11 = arith.mulf %10, %10 : vector<16x128xf32>
    %12 = vector.extract_strided_slice %9 {offsets = [0, 128], sizes = [16, 128], strides = [1, 1]} : vector<16x256xf32> to vector<16x128xf32>
    %13 = arith.mulf %12, %12 : vector<16x128xf32>
    %14 = arith.addf %11, %13 : vector<16x128xf32>
    %15 = math.log1p %14 : vector<16x128xf32>
    %c0_7 = arith.constant 0 : index
    %c0_8 = arith.constant 0 : index
    %c0_9 = arith.constant 0 : index
    %16 = vector.load %arg4[%c0_7, %c0_8, %c0_9] : memref<1x16x128xf32, #tpu.memory_space<vmem>>, vector<1x16x128xf32>
    %17 = vector.shape_cast %16 : vector<1x16x128xf32> to vector<16x128xf32>
    %18 = vector.shape_cast %15 : vector<16x128xf32> to vector<1x16x128xf32>
    tpu.vector_store %arg4[%c0_7, %c0_8, %c0_9], %18 {strides = array<i32>} : memref<1x16x128xf32, #tpu.memory_space<vmem>>, vector<1x16x128xf32>,
    return
  }
  func.func @transform_0(%arg0: i32) -> (i32, i32, i32) {
    %c0_i32 = arith.constant 0 : i32
    %c0_i32_0 = arith.constant 0 : i32
    %c0_i32_1 = arith.constant 0 : i32
    return %arg0, %c0_i32, %c0_i32_0 : i32, i32, i32
  }
  func.func @transform_1(%arg0: i32) -> (i32, i32) {
    %c0_i32 = arith.constant 0 : i32
    %c0_i32_0 = arith.constant 0 : i32
    %c0_i32_1 = arith.constant 0 : i32
    return %c0_i32, %c0_i32_0 : i32, i32
  }
  func.func @transform_2(%arg0: i32) -> (i32, i32) {
    %c0_i32 = arith.constant 0 : i32
    %c0_i32_0 = arith.constant 0 : i32
    %c0_i32_1 = arith.constant 0 : i32
    return %c0_i32, %c0_i32_0 : i32, i32
  }
  func.func @transform_3(%arg0: i32) -> (i32, i32, i32) {
    %c0_i32 = arith.constant 0 : i32
    %c0_i32_0 = arith.constant 0 : i32
    %c0_i32_1 = arith.constant 0 : i32
    return %arg0, %c0_i32, %c0_i32_0 : i32, i32, i32
  }
}

</mosaic_0001>

<bundles_post_ra>
// kernel: tpu_custom_call.1
= control target key start
LH: loop header
LB: loop body
LE: loop exit
PB: predicated region body
PF: predicated region fallthrough
CT: control target
= control target key end

     0   :  { %8 = vsyncpa [#allocation3], 0  ;;  %s673_s0 = inlined_call_operand.vmem [shape: bf16[1,16,128], index: 0, kind: input, shape index: {}]   ;;  %s674_s1 = inlined_call_operand.vmem [shape: bf16[32,16], index: 1, kind: input, shape index: {}]   ;;  %s675_s2 = inlined_call_operand.hbm [shape: bf16[256,256], index: 2, kind: input, shape index: {}]   ;;  %s676_s3 = inlined_call_operand.hbm [shape: f32[1,16,128], index: 3, kind: output, shape index: {}]  }
   0x1   :  { %9 = vsyncpa [#allocation4], 0  ;;  %s18_s14 = sshll.u32 %s675_s2, 4  ;;  %s626_s15 = smov [#allocation2]   ;;  %s19_s14 = int_to_ptr.hbm [resolvable:$true] %s18_s14 }
   0x2   :  { %s20_s16 = sshll.u32 %s626_s15, 4  ;;  %s627_s17 = smov 128   ;;  %s21_s16 = int_to_ptr.vmem [resolvable:$true] %s20_s16 }
   0x3   :  { %s628_s18 = smov 8  }
   0x4   :  { %26 = dma.hbm_to_vmem [thread:$0]  %s19_s14, 4096, %s21_s16, [#allocation3], %s627_s17, %s627_s17, %s628_s18  }
   0x5   :  { %622 = dma.done.wait [#allocation3], 4096  }
   0x6   :  { %623 = vsyncadd [#allocation3], 4294963200  ;;  %v531_v0 = vld [vmem:[%s673_s0] sm:$0xff]  ;;  %vm86_vm0 = vcmask 130048   ;;  %v461_v2 = vld [vmem:[#allocation2 + $0x70] sm:$0xf] }
   0x7   :  { %v532_v1 = vld [vmem:[%s674_s1] sm:$0xff]  ;;  %v549_v3 = vld [vmem:[#allocation2 + $0x74] sm:$0xf0]  ;;  %v548_v4 = vld [vmem:[#allocation2 + $0x74] sm:$0xf]  ;;  %100 = vmatpush.bf16.msra.mxu0 %v531_v0  ;;  %s376_s26 = sshll.u32 %s676_s3, 4  ;;  %s377_s26 = int_to_ptr.hbm [resolvable:$true] %s376_s26 }
   0x8   :  { %v462_v5 = vor.u32 %v549_v3, %v461_v2  ;;  %v463_v6 = vld [vmem:[#allocation2 + $0x78] sm:$0xf0]  ;;  %v453_v7 = vld [vmem:[#allocation2 + $0x60] sm:$0xf]  ;;  %v547_v8 = vld [vmem:[#allocation2 + $0x64] sm:$0xf0] }
   0x9   :  { %v466_v9 = vor.u32 %v548_v4, %v463_v6  ;;  %v546_v10 = vld [vmem:[#allocation2 + $0x64] sm:$0xf]  ;;  %v455_v11 = vld [vmem:[#allocation2 + $0x68] sm:$0xf0]  ;;  %v454_v12 = vor.u32 %v547_v8, %v453_v7  ;;  %v445_v14 = vld [vmem:[#allocation2 + $0x50] sm:$0xf] }
   0xa   :  { %288 = vmatpush.bf16.msra.mxu1 %v462_v5  ;;  %401 = vmatmul.msk.bf16.vlgmr.msra.gmra.mxu0 %vm86_vm0, %v532_v1  ;;  %v458_v13 = vor.u32 %v546_v10, %v455_v11  ;;  %v545_v15 = vld [vmem:[#allocation2 + $0x54] sm:$0xf0]  ;;  %v544_v16 = vld [vmem:[#allocation2 + $0x54] sm:$0xf]  ;;  %v447_v17 = vld [vmem:[#allocation2 + $0x58] sm:$0xf0] }
   0xb   :  { %316 = vmatpush.bf16.msra.mxu3 %v466_v9  ;;  %v446_v18 = vor.u32 %v545_v15, %v445_v14  ;;  %v450_v19 = vor.u32 %v544_v16, %v447_v17  ;;  %v437_v20 = vld [vmem:[#allocation2 + $0x40] sm:$0xf]  ;;  %v543_v21 = vld [vmem:[#allocation2 + $0x44] sm:$0xf0]  ;;  %v542_v22 = vld [vmem:[#allocation2 + $0x44] sm:$0xf] }
   0xc   :  { %v439_v23 = vld [vmem:[#allocation2 + $0x48] sm:$0xf0]  ;;  %v438_v24 = vor.u32 %v543_v21, %v437_v20  ;;  %v429_v27 = vld [vmem:[#allocation2 + $0x30] sm:$0xf]  ;;  %v541_v28 = vld [vmem:[#allocation2 + $0x34] sm:$0xf0] }
   0xd   :  { %v442_v25 = vor.u32 %v542_v22, %v439_v23  ;;  %v533_v26 = vld [vmem:[%s674_s1 + $0x8] sm:$0xff]  ;;  %v525_v29 = vld [vmem:[#allocation2 + $0xf0] sm:$0xf]  ;;  %v430_v30 = vor.u32 %v541_v28, %v429_v27  ;;  %v565_v31 = vld [vmem:[#allocation2 + $0xf4] sm:$0xf0]  ;;  %s629_s1 = smov [#allocation5]  }
   0xe   :  { %289 = vmatpush.bf16.msra.mxu1 %v454_v12  ;;  %v540_v32 = vld [vmem:[#allocation2 + $0x34] sm:$0xf]  ;;  %v431_v33 = vld [vmem:[#allocation2 + $0x38] sm:$0xf0]  ;;  %v526_v34 = vor.u32 %v565_v31, %v525_v29  ;;  %v421_v39 = vld [vmem:[#allocation2 + $0x20] sm:$0xf] }
   0xf   :  { %317 = vmatpush.bf16.msra.mxu3 %v458_v13  ;;  %v434_v35 = vor.u32 %v540_v32, %v431_v33  ;;  %v564_v36 = vld [vmem:[#allocation2 + $0xf4] sm:$0xf]  ;;  %v527_v37 = vld [vmem:[#allocation2 + $0xf8] sm:$0xf0]  ;;  %v539_v40 = vld [vmem:[#allocation2 + $0x24] sm:$0xf0] }
  0x10   :  { %v530_v38 = vor.u32 %v564_v36, %v527_v37  ;;  %302 = vmatpush.bf16.msra.mxu2 %v526_v34  ;;  %v517_v41 = vld [vmem:[#allocation2 + $0xe0] sm:$0xf]  ;;  %v422_v42 = vor.u32 %v539_v40, %v421_v39  ;;  %v563_v43 = vld [vmem:[#allocation2 + $0xe4] sm:$0xf0]  ;;  %v538_v44 = vld [vmem:[#allocation2 + $0x24] sm:$0xf] }
  0x11   :  { %v423_v45 = vld [vmem:[#allocation2 + $0x28] sm:$0xf0]  ;;  %v518_v46 = vor.u32 %v563_v43, %v517_v41  ;;  %v562_v48 = vld [vmem:[#allocation2 + $0xe4] sm:$0xf]  ;;  %v413_v51 = vld [vmem:[#allocation2 + $0x10] sm:$0xf] }
  0x12   :  { %290 = vmatpush.bf16.msra.mxu1 %v446_v18  ;;  %330 = vmatpush.bf16.msrb.mxu0 %v530_v38  ;;  %v426_v47 = vor.u32 %v538_v44, %v423_v45  ;;  %v519_v49 = vld [vmem:[#allocation2 + $0xe8] sm:$0xf0]  ;;  %v537_v52 = vld [vmem:[#allocation2 + $0x14] sm:$0xf0]  ;;  %v509_v53 = vld [vmem:[#allocation2 + $0xd0] sm:$0xf] }
  0x13   :  { %318 = vmatpush.bf16.msra.mxu3 %v450_v19  ;;  %v522_v50 = vor.u32 %v562_v48, %v519_v49  ;;  %v414_v54 = vor.u32 %v537_v52, %v413_v51  ;;  %v561_v55 = vld [vmem:[#allocation2 + $0xd4] sm:$0xf0]  ;;  %v536_v56 = vld [vmem:[#allocation2 + $0x14] sm:$0xf]  ;;  %v415_v57 = vld [vmem:[#allocation2 + $0x18] sm:$0xf0] }
  0x14   :  { %303 = vmatpush.bf16.msra.mxu2 %v518_v46  ;;  %v510_v58 = vor.u32 %v561_v55, %v509_v53  ;;  %v418_v59 = vor.u32 %v536_v56, %v415_v57  ;;  %v560_v60 = vld [vmem:[#allocation2 + $0xd4] sm:$0xf]  ;;  %v511_v61 = vld [vmem:[#allocation2 + $0xd8] sm:$0xf0]  ;;  %v405_v63 = vld [vmem:[#allocation2] sm:$0xf] }
  0x15   :  { %v514_v62 = vor.u32 %v560_v60, %v511_v61  ;;  %v535_v0 = vld [vmem:[#allocation2 + $0x4] sm:$0xf0]  ;;  %v501_v1 = vld [vmem:[#allocation2 + $0xc0] sm:$0xf]  ;;  %v534_v4 = vld [vmem:[#allocation2 + $0x4] sm:$0xf] }
  0x16   :  { %291 = vmatpush.bf16.msra.mxu1 %v438_v24  ;;  %331 = vmatpush.bf16.msrb.mxu0 %v522_v50  ;;  %v406_v2 = vor.u32 %v535_v0, %v405_v63  ;;  %v559_v3 = vld [vmem:[#allocation2 + $0xc4] sm:$0xf0]  ;;  %v407_v5 = vld [vmem:[#allocation2 + $0x8] sm:$0xf0]  ;;  %v558_v8 = vld [vmem:[#allocation2 + $0xc4] sm:$0xf] }
  0x17   :  { %319 = vmatpush.bf16.msra.mxu3 %v442_v25  ;;  %v502_v6 = vor.u32 %v559_v3, %v501_v1  ;;  %v410_v7 = vor.u32 %v534_v4, %v407_v5  ;;  %v503_v9 = vld [vmem:[#allocation2 + $0xc8] sm:$0xf0]  ;;  %v493_v11 = vld [vmem:[#allocation2 + $0xb0] sm:$0xf]  ;;  %v557_v12 = vld [vmem:[#allocation2 + $0xb4] sm:$0xf0] }
  0x18   :  { %304 = vmatpush.bf16.msra.mxu2 %v510_v58  ;;  %v506_v10 = vor.u32 %v558_v8, %v503_v9  ;;  %v556_v13 = vld [vmem:[#allocation2 + $0xb4] sm:$0xf]  ;;  %v494_v14 = vor.u32 %v557_v12, %v493_v11  ;;  %v495_v15 = vld [vmem:[#allocation2 + $0xb8] sm:$0xf0]  ;;  %v485_v17 = vld [vmem:[#allocation2 + $0xa0] sm:$0xf] }
  0x19   :  { %v498_v16 = vor.u32 %v556_v13, %v495_v15  ;;  %v555_v18 = vld [vmem:[#allocation2 + $0xa4] sm:$0xf0]  ;;  %v554_v19 = vld [vmem:[#allocation2 + $0xa4] sm:$0xf]  ;;  %v487_v21 = vld [vmem:[#allocation2 + $0xa8] sm:$0xf0] }
  0x1a   :  { %402 = vmatmul.msk.bf16.gmra.mxu0 %vm86_vm0, %v533_v26  ;;  %292 = vmatpush.bf16.msra.mxu1 %v430_v30  ;;  %v486_v20 = vor.u32 %v555_v18, %v485_v17  ;;  %v490_v22 = vor.u32 %v554_v19, %v487_v21  ;;  %v477_v23 = vld [vmem:[#allocation2 + $0x90] sm:$0xf]  ;;  %v553_v24 = vld [vmem:[#allocation2 + $0x94] sm:$0xf0]  ;;  %v552_v25 = vld [vmem:[#allocation2 + $0x94] sm:$0xf] }
  0x1b   :  { %320 = vmatpush.bf16.msra.mxu3 %v434_v35  ;;  %332 = vmatpush.bf16.msrb.mxu0 %v514_v62  ;;  %v478_v26 = vor.u32 %v553_v24, %v477_v23  ;;  %v479_v27 = vld [vmem:[#allocation2 + $0x98] sm:$0xf0]  ;;  %v469_v29 = vld [vmem:[#allocation2 + $0x80] sm:$0xf]  ;;  %v551_v30 = vld [vmem:[#allocation2 + $0x84] sm:$0xf0] }
  0x1c   :  { %305 = vmatpush.bf16.msra.mxu2 %v502_v6  ;;  %v482_v28 = vor.u32 %v552_v25, %v479_v27  ;;  %v550_v31 = vld [vmem:[#allocation2 + $0x84] sm:$0xf]  ;;  %v470_v32 = vor.u32 %v551_v30, %v469_v29  ;;  %v471_v33 = vld [vmem:[#allocation2 + $0x88] sm:$0xf0]  ;;  %s374_s23 = sshll.u32 %s629_s1, 4  ;;  %s375_s23 = int_to_ptr.vmem [resolvable:$true] %s374_s23 }
  0x1d   :  { %v474_v34 = vor.u32 %v550_v31, %v471_v33 }
  0x1e   :  { %293 = vmatpush.bf16.msra.mxu1 %v422_v42 }
  0x1f   :  { %321 = vmatpush.bf16.msra.mxu3 %v426_v47  ;;  %333 = vmatpush.bf16.msrb.mxu0 %v506_v10 }
  0x20   :  { %306 = vmatpush.bf16.msra.mxu2 %v494_v14 }
  0x22   :  { %294 = vmatpush.bf16.msra.mxu1 %v414_v54 }
  0x23   :  { %322 = vmatpush.bf16.msra.mxu3 %v418_v59  ;;  %334 = vmatpush.bf16.msrb.mxu0 %v498_v16 }
  0x24   :  { %307 = vmatpush.bf16.msra.mxu2 %v486_v20 }
  0x26   :  { %295 = vmatpush.bf16.msra.mxu1 %v406_v2 }
  0x27   :  { %323 = vmatpush.bf16.msra.mxu3 %v410_v7  ;;  %335 = vmatpush.bf16.msrb.mxu0 %v490_v22 }
  0x28   :  { %308 = vmatpush.bf16.msra.mxu2 %v478_v26 }
  0x2b   :  { %336 = vmatpush.bf16.msrb.mxu0 %v482_v28 }
  0x2c   :  { %309 = vmatpush.bf16.msra.mxu2 %v470_v32 }
  0x2f   :  { %337 = vmatpush.bf16.msrb.mxu0 %v474_v34 }
  0x87   :  { %v102_v35 = vpop.f32.mrf.mxu0 }
  0x88   :  { %v112_v36 = vpack.c.bf16 %v102_v35, %v102_v35 }
  0x8a   :  { %v118_v39 = vunpack.c.l.b16 %v112_v36 }
  0x8f   :  { %v104_v37 = vpop.f32.mrf.mxu0 }
  0x90   :  { %v113_v38 = vpack.c.bf16 %v104_v37, %v104_v37 }
  0x92   :  { %v119_v40 = vunpack.c.l.b16 %v113_v38 }
  0x94   :  { %v120_v41 = vpack.c.b16 %v119_v40, %v118_v39 }
  0x96   :  { %296 = vmatmul.bf16.vlgmr.msra.gmra.mxu1 %v120_v41  ;;  %324 = vmatmul.bf16.vlgmr.msra.gmra.mxu3 %v120_v41 }
  0x97   :  { %v107_v42 = vpop.f32.mrf.mxu0 }
  0x98   :  { %v114_v43 = vpack.c.bf16 %v107_v42, %v107_v42 }
  0x9a   :  { %v124_v46 = vunpack.c.l.b16 %v114_v43 }
  0x9f   :  { %v109_v44 = vpop.f32.mrf.mxu0 }
  0xa0   :  { %v115_v45 = vpack.c.bf16 %v109_v44, %v109_v44 }
  0xa2   :  { %v125_v47 = vunpack.c.l.b16 %v115_v45 }
  0xa4   :  { %v126_v48 = vpack.c.b16 %v125_v47, %v124_v46 }
  0xa6   :  { %310 = vmatmul.bf16.vlgmr.msra.gmra.mxu2 %v126_v48  ;;  %338 = vmatmul.bf16.vlgmr.msrb.gmra.mxu0 %v126_v48 }
 0x113   :  { %v297_v51 = vpop.f32.mrf.mxu1 }
 0x119   :  { %v325_v50 = vpop.f32.mrf.mxu3 }
 0x11b   :  { %v299_v62 = vpop.f32.mrf.mxu1 }
 0x121   :  { %v327_v59 = vpop.f32.mrf.mxu3 }
 0x123   :  { %v339_v49 = vpop.f32.mrf.mxu0 }
 0x124   :  { %v340_v52 = vadd.f32 %v339_v49, %v325_v50 }
 0x126   :  { %v346_v55 = vmul.f32 %v340_v52, %v340_v52 }
 0x129   :  { %v311_v53 = vpop.f32.mrf.mxu2 }
 0x12a   :  { %v312_v54 = vadd.f32 %v311_v53, %v297_v51 }
 0x12b   :  { %v341_v57 = vpop.f32.mrf.mxu0 }
 0x12c   :  { %v344_v56 = vmul.f32 %v312_v54, %v312_v54  ;;  %v342_v61 = vadd.f32 %v341_v57, %v327_v59 }
 0x12e   :  { %v348_v58 = vadd.f32 %v346_v55, %v344_v56  ;;  %v347_v2 = vmul.f32 %v342_v61, %v342_v61 }
 0x130   :  { %v350_v60 = vadd.f32 1.0, %v348_v58  ;;  %v353_v63 = vmul.f32 -0.5, %v348_v58  ;;  %v356_v6 = vand.u32 2147483647, %v348_v58 }
 0x131   :  { %v313_v0 = vpop.f32.mrf.mxu2 }
 0x132   :  { %570 = vlog2.f32 %v350_v60  ;;  %v314_v1 = vadd.f32 %v313_v0, %v299_v62  ;;  %v354_v4 = vadd.f32 1.0, %v353_v63  ;;  %vm357_vm1 = vcmp.lt.f32.partialorder %v356_v6, 0.0004427343 }
 0x134   :  { %v345_v3 = vmul.f32 %v314_v1, %v314_v1  ;;  %v355_v9 = vmul.f32 %v354_v4, %v348_v58 }
 0x136   :  { %v349_v5 = vadd.f32 %v347_v2, %v345_v3 }
 0x138   :  { %v571_v7 = vpop.eup %570  ;;  %v359_v8 = vadd.f32 1.0, %v349_v5  ;;  %v362_v10 = vmul.f32 -0.5, %v349_v5  ;;  %v365_v14 = vand.u32 2147483647, %v349_v5 }
 0x139   :  { %v352_v11 = vmul.f32 0.6931472, %v571_v7 }
 0x13a   :  { %572 = vlog2.f32 %v359_v8  ;;  %v363_v13 = vadd.f32 1.0, %v362_v10  ;;  %vm366_vm2 = vcmp.lt.f32.partialorder %v365_v14, 0.0004427343 }
 0x13b   :  { %v358_v12 = vsel %vm357_vm1, %v355_v9, %v352_v11 }
 0x13c   :  { %368 = vst [vmem:[#allocation5] sm:$0xff] %v358_v12  ;;  %v364_v16 = vmul.f32 %v363_v13, %v349_v5 }
 0x140   :  { %v573_v15 = vpop.eup %572 }
 0x141   :  { %v361_v17 = vmul.f32 0.6931472, %v573_v15 }
 0x143   :  { %v367_v18 = vsel %vm366_vm2, %v364_v16, %v361_v17 }
 0x144   :  { %369 = vst [vmem:[#allocation5 + $0x8] sm:$0xff] %v367_v18 }
 0x145   :  { %382 = dma.vmem_to_hbm [thread:$0]  %s375_s23, 256, %s377_s26, [#allocation4], %s627_s17, %s627_s17, %s628_s18  }
 0x146   :  { %624 = dma.done.wait [#allocation4], 256  }
 0x147   :  { %625 = vsyncadd [#allocation4], 4294967040 }
 0x148   :  { %387 = vsyncpa [#allocation3], 1 }
 0x149   :  { %388 = vsyncpa [#allocation4], 1 }

</bundles_post_ra>
